<compile_context>
chip_gen: v6e
topology: v6e:2x2x1
jax: 0.10.0
libtpu: 0.0.40
codegen_flags: <defaults>
</compile_context>

<pallas_src>
import numpy as np
import jax
import jax.numpy as jnp
from jax.experimental import pallas as pl
from jax.experimental.pallas import tpu as pltpu


def penc_kernel(tab_ref, o_ref, cache_ref):
    """Produce one (TX, Y*C) tile of the positional encoding for one batch item.

    tab_ref:   (3, Y*C) f32 constant table:
                 row 0 = per-lane x frequency   (0 for y-part / zero lanes)
                 row 1 = per-lane phase         (0 => sin, pi/2 => cos)
                 row 2 = per-lane constant y-part value (0 for x-part lanes)
    o_ref:     (TX, Y*C) output tile (batch dim squeezed by the BlockSpec)
    cache_ref: (TX, Y*C) VMEM scratch, reused across the innermost batch axis
    """
    # program_id must be read at the kernel top level (NOT inside pl.when) so
    # it is substituted per grid step on every backend.
    xi = pl.program_id(0)
    b = pl.program_id(1)
    tx = o_ref.shape[0]
    x0 = (xi * tx).astype(jnp.float32)

    @pl.when(b == 0)
    def _compute():
        # Global x coordinate of every row of this tile, broadcast over lanes.
        row = jax.lax.broadcasted_iota(jnp.int32, o_ref.shape, 0).astype(jnp.float32) + x0
        freq = tab_ref[0:1, :]
        phase = tab_ref[1:2, :]
        ypart = tab_ref[2:3, :]
        # x-part lanes: sin(x*f) or sin(x*f + pi/2) == cos(x*f).  y-part / zero
        # lanes have freq == phase == 0, so the sin term is exactly 0 and the
        # precomputed y-part supplies the value.
        slab = jnp.sin(row * freq + phase) + ypart
        cache_ref[...] = slab.astype(cache_ref.dtype)

    # b == 0 and steady state: lane-dense writeback of the cached slab.
    o_ref[...] = cache_ref[...]


def _cdiv(a, b):
    return -(-a // b)


def _vmem_budget():
    """Returns (per-buffer tile byte target, explicit vmem_limit_bytes)."""
    try:
        cap = int(pltpu.get_tpu_info().vmem_capacity_bytes)
    except Exception:
        cap = 64 << 20  # conservative: v7x has 64 MiB/TC (v5e/v6e have 128 MiB)
    target = max(1 << 20, cap // 16)             # ~4 MiB on v7x, ~8 MiB on v5e/v6e
    limit = int(min(cap * 3 // 4, 96 << 20))     # <=48 MiB on v7x, 96 MiB elsewhere
    return target, limit


def _choose_tx(X, bytes_per_row, itemsize, vmem_target_bytes):
    """X-tile size: a multiple of the dtype's sublane packing, ~<= the VMEM
    per-buffer target, and (when X allows) at least two tiles so the parallel
    x-axis has work for both TensorCores.  TX need not divide X — the grid
    uses cdiv and the final partial tile is clipped on store."""
    sub = max(8, 32 // max(1, itemsize))         # 8 for f32, 16 bf16, 32 int8/fp8
    if X <= sub:
        return X
    max_rows = max(sub, (vmem_target_bytes // max(1, bytes_per_row)) // sub * sub)
    n_tiles = max(2, _cdiv(X, max_rows))
    tx = _cdiv(_cdiv(X, n_tiles), sub) * sub
    return max(sub, min(tx, X))


def positional_encoding_2d(tensor, org_channels):
    """Pallas equivalent of PositionalEncoding2D(org_channels)(tensor).

    The forward pass uses only the input's shape/dtype (values are ignored),
    so the kernel synthesizes the encoding directly and never reads `tensor`.
    """
    if tensor.ndim != 4:
        raise RuntimeError("The input tensor has to be 4d!")
    B, X, Y, C = tensor.shape

    # ---- compile-time per-lane tables (mirrors __init__ / forward math) ----
    channels = int(np.ceil(org_channels / 4) * 2)
    half = channels // 2
    inv_freq = (1.0 / (10000.0 ** (np.arange(0, channels, 2, dtype=np.float32)
                                   / channels))).astype(np.float32)

    YC = Y * C
    j = np.arange(YC)
    c_idx = j % C
    y_idx = j // C

    freq = np.zeros(YC, np.float32)
    phase = np.zeros(YC, np.float32)
    ypart = np.zeros(YC, np.float32)

    # x-part lanes: c < channels -> sin(x*inv_freq[c%half]) (c<half) / cos (else)
    mx = c_idx < channels
    if half > 0:
        freq[mx] = inv_freq[c_idx[mx] % half]
        phase[mx] = np.where(c_idx[mx] < half, 0.0, np.pi / 2.0)
    # y-part lanes: channels <= c < 2*channels -> constant per (y, c)
    my = (c_idx >= channels) & (c_idx < 2 * channels)
    if my.any():
        pos_y = np.arange(Y, dtype=np.float32)
        sin_inp_y = pos_y[:, None] * inv_freq[None, :]
        emb_y = np.concatenate([np.sin(sin_inp_y), np.cos(sin_inp_y)],
                               axis=-1).astype(np.float32)
        ypart[my] = emb_y[y_idx[my], c_idx[my] - channels]
    # lanes with c >= 2*channels stay exactly 0 (freq = phase = ypart = 0).

    tab = np.stack([freq, phase, ypart], axis=0).astype(np.float32)   # (3, Y*C)

    out_dtype = tensor.dtype
    itemsize = np.dtype(out_dtype).itemsize
    vmem_target, vmem_limit = _vmem_budget()
    TX = _choose_tx(X, YC * itemsize, itemsize, vmem_target)
    nx = _cdiv(X, TX)

    out_flat = pl.pallas_call(
        penc_kernel,
        out_shape=jax.ShapeDtypeStruct((B, X, YC), out_dtype),
        grid=(nx, B),                     # B innermost & sequential => scratch reuse
        in_specs=[pl.BlockSpec((3, YC), lambda xi, b: (0, 0))],
        out_specs=pl.BlockSpec((None, TX, YC), lambda xi, b: (b, xi, 0)),
        scratch_shapes=[pltpu.VMEM((TX, YC), out_dtype)],
        compiler_params=pltpu.CompilerParams(
            # x-tiles are independent ("parallel"; CORE_PARALLEL is a further
            # v7x option).  The batch axis MUST stay sequential ("arbitrary")
            # because b > 0 reads the slab cached at b == 0.
            dimension_semantics=("parallel", "arbitrary"),
            vmem_limit_bytes=vmem_limit),
    )(jnp.asarray(tab))

    # Row-major trailing-dim split: free metadata reshape, no data movement.
    return out_flat.reshape(B, X, Y, C)


def reference_numpy(tensor, org_channels):
    """Pure-numpy reproduction of the PyTorch forward for verification."""
    B, X, Y, C_out = tensor.shape
    channels = int(np.ceil(org_channels / 4) * 2)
    inv_freq = (1.0 / (10000.0 ** (np.arange(0, channels, 2, dtype=np.float32)
                                   / channels))).astype(np.float32)
    pos_x = np.arange(X, dtype=np.float32)
    pos_y = np.arange(Y, dtype=np.float32)
    sin_inp_x = np.einsum("i,j->ij", pos_x, inv_freq)
    sin_inp_y = np.einsum("i,j->ij", pos_y, inv_freq)
    emb_x = np.concatenate([np.sin(sin_inp_x), np.cos(sin_inp_x)], -1)[:, None, :]
    emb_y = np.concatenate([np.sin(sin_inp_y), np.cos(sin_inp_y)], -1)
    emb = np.zeros((X, Y, channels * 2), np.float32)
    emb[:, :, :channels] = emb_x
    emb[:, :, channels:2 * channels] = emb_y
    return np.broadcast_to(emb[None, :, :, :C_out], (B, X, Y, C_out)).astype(tensor.dtype)


if __name__ == "__main__":
    key = jax.random.PRNGKey(0)
    B, X, Y, CH = 2, 16, 16, 4
    x = jax.random.normal(key, (B, X, Y, CH), dtype=jnp.float32)

    out = positional_encoding_2d(x, org_channels=CH)
    out = jax.block_until_ready(out)

    ref = reference_numpy(np.asarray(x), org_channels=CH)
    assert out.shape == (B, X, Y, CH), out.shape
    np.testing.assert_allclose(np.asarray(out), ref, atol=3e-5, rtol=3e-5)
    print("KERNEL_OK")
</pallas_src>

<mosaic_0001>
module attributes {stable_mosaic.version = 11 : i64} {
  func.func @penc_kernel(%arg0: i32, %arg1: i32, %arg2: memref<3x64xf32, #tpu.memory_space<vmem>>, %arg3: memref<1x8x64xf32, #tpu.memory_space<vmem>>, %arg4: memref<8x64xf32, #tpu.memory_space<vmem>>) attributes {dimension_semantics = [#tpu.dimension_semantics<parallel>, #tpu.dimension_semantics<arbitrary>], iteration_bounds = array<i64: 2, 2>, scalar_prefetch = 0 : i64, scratch_operands = 1 : i64, tpu.core_type = #tpu.core_type<tc>, window_params = [{pipeline_mode = #tpu.pipeline_mode<synchronous>, transform_indices = @transform_0, window_bounds = array<i64: 3, 64>}, {transform_indices = @transform_1, window_bounds = array<i64: 1, 8, 64>}]} {
    %c8_i32 = arith.constant 8 : i32
    %0 = arith.muli %arg0, %c8_i32 : i32
    %1 = arith.sitofp %0 : i32 to f32
    %c0_i32 = arith.constant 0 : i32
    %2 = arith.cmpi eq, %arg1, %c0_i32 : i32
    %3 = arith.extui %2 : i1 to i32
    %c0_i32_0 = arith.constant 0 : i32
    %4 = arith.cmpi ne, %3, %c0_i32_0 : i32
    scf.if %4 {
      %9 = tpu.iota {dimensions = array<i32: 0>} : vector<8x64xi32>
      %10 = arith.sitofp %9 : vector<8x64xi32> to vector<8x64xf32>
      %11 = vector.broadcast %1 : f32 to vector<8x64xf32>
      %12 = arith.addf %10, %11 : vector<8x64xf32>
      %c0_5 = arith.constant 0 : index
      %c0_6 = arith.constant 0 : index
      %13 = vector.load %arg2[%c0_5, %c0_6] : memref<3x64xf32, #tpu.memory_space<vmem>>, vector<1x64xf32>
      %c1 = arith.constant 1 : index
      %c0_7 = arith.constant 0 : index
      %14 = vector.load %arg2[%c1, %c0_7] : memref<3x64xf32, #tpu.memory_space<vmem>>, vector<1x64xf32>
      %c2 = arith.constant 2 : index
      %c0_8 = arith.constant 0 : index
      %15 = vector.load %arg2[%c2, %c0_8] : memref<3x64xf32, #tpu.memory_space<vmem>>, vector<1x64xf32>
      %16 = vector.broadcast %13 : vector<1x64xf32> to vector<8x64xf32>
      %17 = arith.mulf %12, %16 : vector<8x64xf32>
      %18 = vector.broadcast %14 : vector<1x64xf32> to vector<8x64xf32>
      %19 = arith.addf %17, %18 : vector<8x64xf32>
      %20 = math.sin %19 : vector<8x64xf32>
      %21 = vector.broadcast %15 : vector<1x64xf32> to vector<8x64xf32>
      %22 = arith.addf %20, %21 : vector<8x64xf32>
      %c0_9 = arith.constant 0 : index
      %c0_10 = arith.constant 0 : index
      %23 = vector.load %arg4[%c0_9, %c0_10] : memref<8x64xf32, #tpu.memory_space<vmem>>, vector<8x64xf32>
      tpu.vector_store %arg4[%c0_9, %c0_10], %22 {strides = array<i32>} : memref<8x64xf32, #tpu.memory_space<vmem>>, vector<8x64xf32>,
    } else {
    }
    %c0 = arith.constant 0 : index
    %c0_1 = arith.constant 0 : index
    %5 = vector.load %arg4[%c0, %c0_1] : memref<8x64xf32, #tpu.memory_space<vmem>>, vector<8x64xf32>
    %c0_2 = arith.constant 0 : index
    %c0_3 = arith.constant 0 : index
    %c0_4 = arith.constant 0 : index
    %6 = vector.load %arg3[%c0_2, %c0_3, %c0_4] : memref<1x8x64xf32, #tpu.memory_space<vmem>>, vector<1x8x64xf32>
    %7 = vector.shape_cast %6 : vector<1x8x64xf32> to vector<8x64xf32>
    %8 = vector.shape_cast %5 : vector<8x64xf32> to vector<1x8x64xf32>
    tpu.vector_store %arg3[%c0_2, %c0_3, %c0_4], %8 {strides = array<i32>} : memref<1x8x64xf32, #tpu.memory_space<vmem>>, vector<1x8x64xf32>,
    return
  }
  func.func @transform_0(%arg0: i32, %arg1: i32) -> (i32, i32) {
    %c0_i32 = arith.constant 0 : i32
    %c0_i32_0 = arith.constant 0 : i32
    %c0_i32_1 = arith.constant 0 : i32
    return %c0_i32, %c0_i32_0 : i32, i32
  }
  func.func @transform_1(%arg0: i32, %arg1: i32) -> (i32, i32, i32) {
    %c0_i32 = arith.constant 0 : i32
    %c0_i32_0 = arith.constant 0 : i32
    return %arg1, %arg0, %c0_i32 : i32, i32, i32
  }
}

</mosaic_0001>

<bundles_post_ra>
// kernel: tpu_custom_call.1
= control target key start
LH: loop header
LB: loop body
LE: loop exit
PB: predicated region body
PF: predicated region fallthrough
CT: control target
= control target key end

     0   :  { %6 = vsyncpa [#allocation4], 0  ;;  %s779_s0 = inlined_call_operand.hbm [shape: f32[3,64], index: 0, kind: input, shape index: {}]   ;;  %s780_s1 = inlined_call_operand.hbm [shape: f32[2,16,64], index: 1, kind: output, shape index: {}]  }
   0x1   :  { %7 = vsyncpa [#allocation5], 0 }
   0x2   :  { %9 = vsyncpa [#allocation5 + $0x1], 0  ;;  %s607_s6 = smov 0   ;;  %s609_s7 = smov 0  }
   0x3   :  { %s611_s8 = smov 0   ;;  %s613_s9 = smov 0  }
   0x4   :  { %s615_s10 = smov 0   ;;  %s617_s11 = smov 0  }
   0x5   :  { %s619_s12 = smov 0   ;;  %s621_s13 = smov 0  }
   0x6 LB: > { %s348_s14 = sadd.s32 4294967295, %s587_s13   ;;  %s349_s15 = sadd.s32 4294967294, %s587_s13   ;;  %s587_s13 = sphi %s621_s13, %s15_s13   ;;  %s583_s12 = sphi %s619_s12, %s792_s12   ;;  %s579_s11 = sphi %s617_s11, %s791_s11   ;;  %s575_s10 = sphi %s615_s10, %s790_s10   ;;  %s571_s9 = sphi %s613_s9, %s789_s9   ;;  %s567_s8 = sphi %s611_s8, %s788_s8   ;;  %s563_s7 = sphi %s609_s7, %s787_s7   ;;  %s559_s6 = sphi %s607_s6, %s786_s6  }
   0x7   : > { %s24_s16 = sadd.s32 1, %s579_s11  ;;  %s27_s17 = sadd.s32 1, %s583_s12 }
   0x8   : > { %p25_p0 = scmp.ge.s32.totalorder %s24_s16, 2  ;;  %s57_s18 = sadd.s32 1, %s567_s8 }
   0x9   : > { %p67_p1 = scmp.ne.s32.totalorder %s567_s8, %s563_s7  ;;  %p68_p2 = scmp.eq.s32.totalorder %s348_s14, 3 }
   0xa   : > { %s794_s16 = smov (%p25_p0, %s24_s16), 0  ;;  %s796_s17 = smov (!%p25_p0, %s27_s17), %s583_s12 }
   0xb   : > { %s52_s19 = ssub.s32 %s579_s11, %s794_s16  ;;  %p659_p3 = por %p68_p2, %p67_p1 }
   0xc   : > { %p29_p4 = scmp.ge.s32.totalorder %s796_s17, 2  ;;  %p73_p5 = scmp.ne.s32.totalorder %s563_s7, %s559_s6 }
   0xd   : > { %p74_p6 = scmp.eq.s32.totalorder %s349_s15, 3  ;;  %p350_p7 = scmp.ge.s32.totalorder %s587_s13, 1 }
   0xe   : > { %s798_s17 = smov (%p29_p4, %s796_s17), 0  ;;  %p81_p9 = scmp.lt.s32.totalorder %s587_s13, 5 }
   0xf   : > { %p668_p8 = por %p74_p6, %p73_p5  ;;  %s53_s22 = ssub.s32 %s583_s12, %s798_s17 }
  0x10   : > { %s54_s23 = sor.u32 %s53_s22, %s52_s19  ;;  %p675_p10 = pnand %p350_p7, %p81_p9 }
  0x11   : > { %s782_s21 = scalar_select %p668_p8, 1, 0 }
  0x12   : > { %p55_p11 = scmp.eq.s32.totalorder %s54_s23, 0  ;;  %p679_p12 = scmp.eq.s32.totalorder %s348_s14, 0 }
  0x13   : > { %p379_p13 = pneg %p675_p10  ;;  %s589_s27 = smov [#allocation3]  }
  0x14   : > { %s686_s26 = scalar_select %p55_p11, %s567_s8, %s57_s18  }
  0x15   : > { %s94_s28 = sshll.u32 %s589_s27, 4  ;;  %p380_p0 = pnand %p679_p12, %p379_p13  ;;  %s95_s28 = int_to_ptr.vmem [resolvable:$true] %s94_s28 }
  0x16   : > { %s476_s29 = scalar_lea.vmem %s95_s28, 64  ;;  %p484_p6 = scmp.lt.s32.totalorder %s95_s28, %s95_s28 }
  0x17   : > { %p467_p1 = pneg %p380_p0  ;;  %p477_p2 = scmp.ne.s32.totalorder %s95_s28, %s476_s29 }
  0x18   : > { %p485_p7 = scmp.lt.s32.totalorder %s476_s29, %s476_s29 }
  0x19   : > { %p479_p4 = pnand %p477_p2, %p467_p1 }
  0x1a   : > { %p486_p9 = por %p485_p7, %p484_p6 }
  0x1b   : > { %p480_p5 = pneg %p479_p4 }
  0x1d   : > { %p487_p8 = pnand %p486_p9, %p480_p5 }
  0x1f   : > { %490 = shalt.err (!%p487_p8)
}
  0x20   : > { %382 = dma.hbm_to_vmem [thread:$0]  (!%p380_p0), %s779_s0, 64, %s95_s28, [#allocation4]  }
  0x21   : > { %107 = sbr.rel (%p675_p10) target bundleno = 171 (0xab), region = 24 }
  0x26   : > { %550 = dma.done.wait (%p679_p12), [#allocation4], 64  }
  0x27   : > { %552 = vsyncadd (%p679_p12), [#allocation4], 4294967232  ;;  %s119_s3 = sand.u32 1, %s563_s7   ;;  %s355_s4 = sshll.u32 %s575_s10, 3 }
  0x28   : > { %s703_s5 = sshll.u32 %s119_s3, 3  ;;  %s123_s14 = scvt.s32.f32 %s355_s4 }
  0x29   : > { %s121_s15 = scalar_lea.vmem [#allocation6], %s703_s5  ;;  %p356_p8 = scmp.ne.s32.totalorder %s571_s9, 0 }
  0x2b   : > { %127 = sbr.rel (%p356_p8) target bundleno = 146 (0x92), region = 32 }
  0x30   : > { %v128_v0 = vlaneseq  ;;  %v131_v2 = vstv %s123_s14  ;;  %v357_v4 = vld [vmem:[#allocation3] ss:$0 sm:$0xff]  ;;  %v358_v6 = vld [vmem:[#allocation3 + $0x1] ss:$0 sm:$0xff]  ;;  %v590_v20 = vmov 683565275  }
  0x31   : > { %v591_v22 = vmov 2475754826   ;;  %v592_v24 = vmov 2131351028   ;;  %v593_v26 = vmov 2102212464  }
  0x32   : > { %v129_v1 = vshrl.u32 %v128_v0, 7  ;;  %v594_v28 = vmov 920167782   ;;  %v595_v35 = vmov 1326507024   ;;  %vm255_vm13 = vcmask 523264  }
  0x34   : > { %v130_v3 = vcvt.s32.f32 %v129_v1 }
  0x36   : > { %v132_v5 = vadd.f32 %v131_v2, %v130_v3 }
  0x38   : > { %v140_v7 = vmul.f32 %v357_v4, %v132_v5 }
  0x3a   : > { %v707_v8 = vadd.f32 %v358_v6, %v140_v7 }
  0x3c   : > { %v149_v9 = vand.u32 2139095040, %v707_v8  ;;  %v146_v11 = vand.u32 2147483647, %v707_v8  ;;  %vm148_vm7 = vcmp.lt.s32.totalorder %v707_v8, 0  ;;  %vm238_vm12 = vweird.f32 %v707_v8 }
  0x3e   : > { %v150_v10 = vshrl.u32 %v149_v9, 23  ;;  %v153_v14 = vand.u32 8388607, %v146_v11  ;;  %vm147_vm8 = vcmp.le.f32.partialorder %v146_v11, 0.7853982 }
  0x40   : > { %v359_v12 = vadd.s32 4294967169, %v150_v10  ;;  %v154_v17 = vor.u32 8388608, %v153_v14 }
  0x42   : > { %v156_v13 = vadd.s32 1, %v359_v12  ;;  %v194_v37 = vshll.u32 %v154_v17, 8 }
  0x44   : > { %vm157_vm0 = vcmp.gt.s32.totalorder %v156_v13, 0 }
  0x45   : > { %v158_v15 = vsel %vm157_vm0, %v156_v13, 0 }
  0x46   : > { %v160_v16 = vand.u32 31, %v158_v15  ;;  %v159_v18 = vshrl.u32 %v158_v15, 5 }
  0x48   : > { %v161_v19 = vsub.s32 32, %v160_v16  ;;  %v163_v21 = vshll.u32 %v590_v20, %v160_v16  ;;  %v166_v23 = vshll.u32 %v591_v22, %v160_v16  ;;  %v169_v25 = vshll.u32 %v592_v24, %v160_v16 }
  0x49   : > { %v172_v27 = vshll.u32 %v593_v26, %v160_v16  ;;  %v175_v29 = vshll.u32 %v594_v28, %v160_v16  ;;  %vm178_vm1 = vcmp.lt.s32.totalorder %v159_v18, 1  ;;  %vm181_vm2 = vcmp.lt.s32.totalorder %v159_v18, 4 }
  0x4a   : > { %v162_v30 = vshrl.u32 %v590_v20, %v161_v19  ;;  %v164_v31 = vshrl.u32 %v591_v22, %v161_v19  ;;  %v167_v32 = vshrl.u32 %v592_v24, %v161_v19  ;;  %v170_v33 = vshrl.u32 %v593_v26, %v161_v19 }
  0x4b   : > { %v173_v34 = vshrl.u32 %v594_v28, %v161_v19  ;;  %v176_v36 = vshrl.u32 %v595_v35, %v161_v19  ;;  %vm179_vm3 = vcmp.lt.s32.totalorder %v159_v18, 2  ;;  %vm180_vm4 = vcmp.lt.s32.totalorder %v159_v18, 3 }
  0x4c   : > { %v165_v38 = vor.u32 %v164_v31, %v163_v21  ;;  %v168_v39 = vor.u32 %v167_v32, %v166_v23  ;;  %v171_v40 = vor.u32 %v170_v33, %v169_v25 }
  0x4d   : > { %v174_v41 = vor.u32 %v173_v34, %v172_v27  ;;  %v177_v42 = vor.u32 %v176_v36, %v175_v29  ;;  %v363_v34 = vld [vmem:[#allocation3 + $0x2] ss:$0 sm:$0xff] }
  0x4e   : > { %v182_v43 = vsel %vm178_vm1, %v162_v30, %v165_v38  ;;  %v183_v44 = vsel %vm181_vm2, %v171_v40, 2102212464  ;;  %v186_v45 = vsel %vm178_vm1, %v165_v38, %v168_v39  ;;  %v190_v46 = vsel %vm178_vm1, %v168_v39, %v171_v40 }
  0x4f   : > { %v184_v47 = vsel %vm180_vm4, %v168_v39, %v183_v44  ;;  %v187_v48 = vsel %vm181_vm2, %v174_v41, 920167782  ;;  %v191_v49 = vsel %vm181_vm2, %v177_v42, 1326507024 }
  0x50   : > { %v188_v50 = vsel %vm180_vm4, %v171_v40, %v187_v48  ;;  %v192_v51 = vsel %vm180_vm4, %v174_v41, %v191_v49  ;;  %v185_v52 = vsel %vm179_vm3, %v182_v43, %v184_v47 }
  0x51   : > { %v189_v53 = vsel %vm179_vm3, %v186_v45, %v188_v50  ;;  %v193_v54 = vsel %vm179_vm3, %v190_v46, %v192_v51  ;;  %v201_v59 = vmul.u32 %v194_v37, %v185_v52 }
  0x52   : > { %v713_v55 = vmul.u32.u64.low %v194_v37, %v193_v54  ;;  %v714_v56 = vmul.u32.u64.high %v194_v37, %v193_v54, %v713_v55  ;;  %v716_v57 = vmul.u32.u64.low %v194_v37, %v189_v53  ;;  %v717_v58 = vmul.u32.u64.high %v194_v37, %v189_v53, %v716_v57 }
  0x54   : > { %vm203_vm5 = vc.u32 %v714_v56, %v716_v57  ;;  %v204_v60 = vadd.s32 1, %v717_v58  ;;  %v202_v7 = vadd.s32 %v716_v57, %v714_v56 }
  0x56   : > { %v205_v61 = vsel %vm203_vm5, %v204_v60, %v717_v58 }
  0x57   : > { %v206_v62 = vadd.s32 %v205_v61, %v201_v59 }
  0x59   : > { %v207_v63 = vadd.s32 536870912, %v206_v62 }
  0x5b   : > { %v208_v0 = vshrl.u32 %v207_v63, 30 }
  0x5d   : > { %v209_v1 = vshll.u32 %v208_v0, 30  ;;  %v232_v22 = vsub.s32 4, %v208_v0 }
  0x5f   : > { %v210_v2 = vsub.s32 %v206_v62, %v209_v1  ;;  %v233_v25 = vsel %vm148_vm7, %v232_v22, %v208_v0 }
  0x60   : > { %v235_v27 = vsel %vm147_vm8, 0, %v233_v25 }
  0x61   : > { %v212_v3 = vsub.s32 0, %v210_v2  ;;  %v239_v28 = vadd.s32 3, %v235_v27 }
  0x63   : > { %v360_v4 = vmin.u32 %v212_v3, %v210_v2  ;;  %v240_v29 = vand.u32 3, %v239_v28 }
  0x65   : > { %v214_v5 = vclz %v360_v4  ;;  %vm245_vm9 = vcmp.eq.s32.totalorder %v240_v29, 2  ;;  %vm242_vm10 = vcmp.eq.s32.totalorder %v240_v29, 0  ;;  %vm241_vm11 = vcmp.lt.s32.totalorder %v240_v29, 2 }
  0x67   : > { %v361_v6 = vadd.s32 4294967294, %v214_v5 }
  0x69   : > { %vm362_vm6 = vcmp.lt.s32.totalorder %v361_v6, 0 }
  0x6a   : > { %v217_v9 = vsel %vm362_vm6, 0, %v361_v6 }
  0x6b   : > { %v218_v10 = vsub.s32 32, %v217_v9  ;;  %v219_v12 = vshll.u32 %v210_v2, %v217_v9  ;;  %v222_v13 = vsub.s32 4294967266, %v217_v9 }
  0x6d   : > { %v220_v14 = vshrl.u32 %v202_v7, %v218_v10  ;;  %v223_v15 = vadd.s32 127, %v222_v13 }
  0x6f   : > { %v221_v16 = vor.u32 %v220_v14, %v219_v12  ;;  %v224_v17 = vshll.u32 %v223_v15, 23 }
  0x71   : > { %v225_v18 = vor.u32 4788187, %v224_v17  ;;  %v228_v19 = vcvt.s32.f32 %v221_v16 }
  0x73   : > { %v226_v20 = vand.u32 2147483647, %v225_v18 }
  0x75   : > { %v229_v21 = vmul.f32 %v228_v19, %v226_v20 }
  0x77   : > { %v230_v23 = vxor.u32 2147483648, %v229_v21 }
  0x79   : > { %v231_v24 = vsel %vm148_vm7, %v230_v23, %v229_v21 }
  0x7a   : > { %v234_v26 = vsel %vm147_vm8, %v707_v8, %v231_v24 }
  0x7b   : > { %461 = vcosq.f32 %v234_v26 }
  0x7c   : > { %463 = vsinq.f32 %v234_v26 }
  0x88   : > { %v462_v30 = vpop.eup %461 }
  0x89   : > { %v464_v31 = vpop.eup %463  ;;  %v246_v32 = vxor.u32 2147483648, %v462_v30 }
  0x8a   : > { %v243_v33 = vxor.u32 2147483648, %v464_v31 }
  0x8b   : > { %v247_v11 = vsel %vm245_vm9, %v246_v32, %v464_v31 }
  0x8c   : > { %v244_v35 = vsel %vm242_vm10, %v462_v30, %v243_v33 }
  0x8d   : > { %v248_v36 = vsel %vm241_vm11, %v244_v35, %v247_v11 }
  0x8e   : > { %v249_v37 = vsel %vm238_vm12, nan, %v248_v36 }
  0x8f   : > { %v254_v38 = vadd.f32 %v363_v34, %v249_v37 }
  0x91   : > { %256 = vst.msk [vmem:[#allocation2] sm:$0xff] %vm255_vm13, %v254_v38 }
  0x92 PF: > { %vm258_vm14 = vcmask 523264   ;;  %s365_s18 = sshll.u32 %s571_s9, 1  ;;  %s276_s22 = sshll.u32 %s121_s15, 4  ;;  %s277_s22 = int_to_ptr.vmem [resolvable:$true] %s276_s22 }
  0x93   : > { %s272_s19 = sadd.s32 %s575_s10, %s365_s18  ;;  %s261_s28 = scalar_lea.sflag [#allocation5], %s119_s3 }
  0x94   : > { %s366_s23 = sshll.u32 %s272_s19, 7  ;;  %s491_s29 = scalar_lea.vmem %s277_s22, 128 }
  0x95   : > { %s274_s27 = scalar_lea.hbm %s780_s1, %s366_s23  ;;  %p492_p10 = scmp.ne.s32.totalorder %s277_s22, %s491_s29 }
  0x96   : > { %s596_s30 = smov [#allocation6]  }
  0x97   : > { %p493_p11 = pnand %p492_p10, %p659_p3  ;;  %s495_s9 = sshll.u32 %s596_s30, 4  ;;  %s496_s9 = int_to_ptr.vmem [resolvable:$false] %s495_s9 }
  0x98   : > { %v257_v39 = vld [vmem:[#allocation2] sm:$0xff]  ;;  %s497_s2 = scalar_lea.vmem %s496_s9, 256  ;;  %p498_p13 = scmp.lt.s32.totalorder %s277_s22, %s496_s9 }
  0x99   : > { %259 = vst.msk [vmem:[%s121_s15] sm:$0xff] %vm258_vm14, %v257_v39  ;;  %p494_p12 = pneg %p493_p11  ;;  %p499_p0 = scmp.lt.s32.totalorder %s497_s2, %s491_s29 }
  0x9b   : > { %p500_p1 = por %p499_p0, %p498_p13 }
  0x9d   : > { %p501_p2 = pnand %p500_p1, %p494_p12 }
  0x9f   : > { %504 = shalt.err (!%p501_p2)
}
  0xa0   : > { %s505_s10 = scalar_lea.hbm %s274_s27, 128  ;;  %s509_s5 = scalar_lea.hbm %s780_s1, 512 }
  0xa1   : > { %p506_p4 = scmp.ne.s32.totalorder %s274_s27, %s505_s10  ;;  %p510_p7 = scmp.lt.s32.totalorder %s274_s27, %s780_s1 }
  0xa2   : > { %p511_p9 = scmp.lt.s32.totalorder %s509_s5, %s505_s10 }
  0xa3   : > { %p507_p5 = pnand %p506_p4, %p659_p3 }
  0xa4   : > { %p512_p8 = por %p511_p9, %p510_p7 }
  0xa5   : > { %p508_p6 = pneg %p507_p5 }
  0xa7   : > { %p513_p10 = pnand %p512_p8, %p508_p6 }
  0xa9   : > { %516 = shalt.err (!%p513_p10)
}
  0xaa   : > { %377 = dma.vmem_to_hbm [thread:$0]  (%p659_p3), %s277_s22, 128, %s274_s27, %s261_s28  }
  0xab PF: > { %p389_p11 = scmp.ge.s32.totalorder %s587_s13, 2  ;;  %s288_s18 = sand.u32 1, %s559_s6  }
  0xac   : > { %p785_p12 = scmp.ne.s32.totalorder %s782_s21, 0  ;;  %s289_s19 = scalar_lea.sflag [#allocation5], %s288_s18 }
  0xae   : > { %p384_p13 = pnand %p389_p11, %p785_p12 }
  0xb0   : > { %p385_p0 = pneg %p384_p13 }
  0xb2   : > { %554 = dma.done.wait (%p385_p0), %s289_s19, 128  }
  0xb3   : > { %556 = vsyncadd (%p385_p0), %s289_s19, 4294967168  ;;  %s15_s13 = sadd.s32 1, %s587_s13   ;;  %s786_s6 = smov %s563_s7 }
  0xb4   : > { %p12_p1 = scmp.ge.s32.totalorder %s15_s13, 6   ;;  %s787_s7 = smov %s567_s8 }
  0xb5   : > { %s788_s8 = smov %s686_s26  ;;  %s789_s9 = smov %s579_s11 }
  0xb6   : > { %s790_s10 = smov %s583_s12  ;;  %s791_s11 = smov %s794_s16 }
  0xb7   : > { %s792_s12 = smov %s798_s17  ;;  %14 = sbr.rel (!%p12_p1) target bundleno = 6 (0x6), region = 65 }
  0xbc   :  { %294 = vsyncpa [#allocation4], 1 }
  0xbd   :  { %296 = vsyncpa [#allocation4 + $0x1], 1 }
  0xbe   :  { %297 = vsyncpa [#allocation5], 1 }
  0xbf   :  { %299 = vsyncpa [#allocation5 + $0x1], 1 }

</bundles_post_ra>
